<compile_context>
chip_gen: v7x
topology: tpu7x:2x2x1
jax: 0.10.0
libtpu: 0.0.40
codegen_flags: <defaults>
</compile_context>

<pallas_src>
import jax
import jax.numpy as jnp
from jax import lax
from jax.experimental import pallas as pl
from jax.experimental.pallas import tpu as pltpu

ALPHA = -1.5   # edge normalization exponent (x^-1.5 == rsqrt(x)^3)
BETA = -0.5    # node normalization exponent (x^-0.5 == rsqrt(x))


def _round_up(x, m):
    return ((x + m - 1) // m) * m


# ---------------------------------------------------------------------------
# Pass 1: column statistics (reduction over node tiles)
# ---------------------------------------------------------------------------
def _stats_kernel(b1_ref, edge_norm_ref, col_factor_ref):
    t = pl.program_id(0)
    B1 = b1_ref[...]                                                  # (tn, Ep)
    mask = (B1 != 0.0).astype(jnp.float32)
    node_sum = jnp.sum(B1, axis=1, keepdims=True)                     # (tn, 1)
    node_norm = jnp.where(node_sum > 0.0, lax.rsqrt(node_sum), 0.0)   # x^beta (guarded)

    @pl.when(t == 0)
    def _():
        edge_norm_ref[...] = jnp.zeros_like(edge_norm_ref)
        col_factor_ref[...] = jnp.zeros_like(col_factor_ref)

    # During accumulation these output refs hold the raw sums.
    edge_norm_ref[...] += jnp.sum(B1, axis=0, keepdims=True)                   # edge_sum
    col_factor_ref[...] += jnp.sum(mask * node_norm, axis=0, keepdims=True)    # col_nn_sum

    @pl.when(t == pl.num_programs(0) - 1)
    def _():
        edge_sum = edge_norm_ref[...]                                 # (1, Ep)
        col_nn = col_factor_ref[...]                                  # (1, Ep)
        r = lax.rsqrt(edge_sum)
        e_norm = jnp.where(edge_sum > 0.0, r * r * r, 0.0)            # x^alpha (guarded)
        edge_norm_ref[...] = e_norm
        col_factor_ref[...] = jnp.where(col_nn > 0.0, e_norm / col_nn, 0.0)


# ---------------------------------------------------------------------------
# Pass 2: accumulate x_1 over node tiles, finalize bias / relu / x1m
# ---------------------------------------------------------------------------
def _x1_kernel(b1_ref, x0_ref, w01_ref, w10_ref, b01_ref, en_ref, cf_ref,
               x1_out_ref, x1m_ref, rowf_ref):
    t = pl.program_id(0)
    B1 = b1_ref[...]                                                  # (tn, Ep)
    mask = (B1 != 0.0).astype(jnp.float32)
    node_sum = jnp.sum(B1, axis=1, keepdims=True)                     # (tn, 1)
    node_norm = jnp.where(node_sum > 0.0, lax.rsqrt(node_sum), 0.0)
    row_en = jnp.sum(mask * en_ref[...], axis=1, keepdims=True)       # (tn, 1)
    row_factor = jnp.where(row_en > 0.0, node_norm / row_en, 0.0)     # tiny (tn,1) divide
    rowf_ref[...] = row_factor                                        # reused in pass 3

    # B1n[i,j] = B1[i,j] * (node_norm[i]/row_en[i]) * (edge_norm[j]/col_nn[j])
    # (no jnp.where needed: B1 == 0 entries stay exactly 0, factors are finite/guarded)
    B1n = (B1 * row_factor) * cf_ref[...]                             # (tn, Ep)

    xm0 = jnp.dot(x0_ref[...], w01_ref[...],
                  preferred_element_type=jnp.float32)                 # (tn, Hp)
    # Contract over the node-tile axis directly on the MXU (no explicit transpose).
    partial = lax.dot_general(B1n, xm0,
                              dimension_numbers=(((0,), (0,)), ((), ())),
                              preferred_element_type=jnp.float32)     # (Ep, Hp)

    @pl.when(t == 0)
    def _():
        x1_out_ref[...] = jnp.zeros_like(x1_out_ref)

    x1_out_ref[...] += partial

    @pl.when(t == pl.num_programs(0) - 1)
    def _():
        x1_pre = x1_out_ref[...] + b01_ref[...]                       # pre-ReLU x_1
        x1m_ref[...] = jnp.dot(x1_pre, w10_ref[...],
                               preferred_element_type=jnp.float32)    # x_1 @ W_1to0
        x1_out_ref[...] = jnp.maximum(x1_pre, 0.0)                    # relu(x_1)


# ---------------------------------------------------------------------------
# Pass 3: x_0' per node tile (independent tiles -> "parallel" grid axis)
# ---------------------------------------------------------------------------
def _x0_kernel(b1_ref, rowf_ref, cf_ref, x1m_ref, b10_ref, x0_out_ref):
    B1n = (b1_ref[...] * rowf_ref[...]) * cf_ref[...]                 # (tn, Ep)
    x0n = jnp.dot(B1n, x1m_ref[...],
                  preferred_element_type=jnp.float32) + b10_ref[...]  # (tn, Hp)
    x0_out_ref[...] = jnp.maximum(x0n, 0.0)                           # ReLU fused in store


# ---------------------------------------------------------------------------
# Wrapper
# ---------------------------------------------------------------------------
def hnhn_layer(x0, incidence_1, w01, w10, b01, b10, *, block_nodes=256):
    """Pallas-backed ModifiedHNHNLayer forward.

    Returns (relu(x_0_out), relu(x_1)) of shapes (n_nodes, hidden), (n_edges, hidden).
    """
    x0 = jnp.asarray(x0, jnp.float32)
    incidence_1 = jnp.asarray(incidence_1, jnp.float32)
    w01 = jnp.asarray(w01, jnp.float32)
    w10 = jnp.asarray(w10, jnp.float32)
    b01 = jnp.asarray(b01, jnp.float32).reshape(1, -1)
    b10 = jnp.asarray(b10, jnp.float32).reshape(1, -1)

    n_nodes, n_edges = incidence_1.shape
    in_ch = x0.shape[1]
    hidden = w01.shape[1]

    # Lane-dense padding (lane axis -> multiple of 128; node axis -> multiple of tile).
    Ep = _round_up(n_edges, 128)
    Hp = _round_up(hidden, 128)
    Cp = _round_up(in_ch, 128)
    tn = max(8, (min(block_nodes, _round_up(n_nodes, 8)) // 8) * 8)
    Np = _round_up(n_nodes, tn)
    T = Np // tn

    B1p = jnp.pad(incidence_1, ((0, Np - n_nodes), (0, Ep - n_edges)))
    x0p = jnp.pad(x0, ((0, Np - n_nodes), (0, Cp - in_ch)))
    w01p = jnp.pad(w01, ((0, Cp - in_ch), (0, Hp - hidden)))
    w10p = jnp.pad(w10, ((0, Hp - hidden), (0, Hp - hidden)))
    b01p = jnp.pad(b01, ((0, 0), (0, Hp - hidden)))
    b10p = jnp.pad(b10, ((0, 0), (0, Hp - hidden)))

    # TODO(synk): for tolerance-relaxed deployments, cast matmul operands to bf16
    # (keep preferred_element_type=f32) for full-rate MXU on v6e/v7x; kept f32 here
    # to preserve 1e-4 parity with the f32 PyTorch reference.

    # ---- Pass 1: column statistics (reduction over node tiles) ----
    edge_norm, col_factor = pl.pallas_call(
        _stats_kernel,
        out_shape=(jax.ShapeDtypeStruct((1, Ep), jnp.float32),
                   jax.ShapeDtypeStruct((1, Ep), jnp.float32)),
        grid=(T,),
        in_specs=[pl.BlockSpec((tn, Ep), lambda t: (t, 0))],
        out_specs=(pl.BlockSpec((1, Ep), lambda t: (0, 0)),
                   pl.BlockSpec((1, Ep), lambda t: (0, 0))),
        compiler_params=pltpu.CompilerParams(dimension_semantics=("arbitrary",)),
    )(B1p)

    # ---- Pass 2: x_1 accumulation over node tiles + finalize ----
    x1_relu_p, x1m, row_factor = pl.pallas_call(
        _x1_kernel,
        out_shape=(jax.ShapeDtypeStruct((Ep, Hp), jnp.float32),
                   jax.ShapeDtypeStruct((Ep, Hp), jnp.float32),
                   jax.ShapeDtypeStruct((Np, 1), jnp.float32)),
        grid=(T,),
        in_specs=[
            pl.BlockSpec((tn, Ep), lambda t: (t, 0)),   # incidence tile
            pl.BlockSpec((tn, Cp), lambda t: (t, 0)),   # x_0 tile
            pl.BlockSpec((Cp, Hp), lambda t: (0, 0)),   # W_0to1
            pl.BlockSpec((Hp, Hp), lambda t: (0, 0)),   # W_1to0
            pl.BlockSpec((1, Hp), lambda t: (0, 0)),    # bias_0_to_1
            pl.BlockSpec((1, Ep), lambda t: (0, 0)),    # edge_norm
            pl.BlockSpec((1, Ep), lambda t: (0, 0)),    # col_factor
        ],
        out_specs=(
            pl.BlockSpec((Ep, Hp), lambda t: (0, 0)),   # relu(x_1)  (resident accumulator)
            pl.BlockSpec((Ep, Hp), lambda t: (0, 0)),   # x1m = x_1 @ W_1to0 (resident)
            pl.BlockSpec((tn, 1), lambda t: (t, 0)),    # per-row normalization factor
        ),
        compiler_params=pltpu.CompilerParams(dimension_semantics=("arbitrary",)),
    )(B1p, x0p, w01p, w10p, b01p, edge_norm, col_factor)

    # ---- Pass 3: x_0' per node tile (megacore-parallel on v7x) ----
    x0_out_p = pl.pallas_call(
        _x0_kernel,
        out_shape=jax.ShapeDtypeStruct((Np, Hp), jnp.float32),
        grid=(T,),
        in_specs=[
            pl.BlockSpec((tn, Ep), lambda t: (t, 0)),   # incidence tile
            pl.BlockSpec((tn, 1), lambda t: (t, 0)),    # row_factor tile
            pl.BlockSpec((1, Ep), lambda t: (0, 0)),    # col_factor
            pl.BlockSpec((Ep, Hp), lambda t: (0, 0)),   # x1m
            pl.BlockSpec((1, Hp), lambda t: (0, 0)),    # bias_1_to_0
        ],
        out_specs=pl.BlockSpec((tn, Hp), lambda t: (t, 0)),
        compiler_params=pltpu.CompilerParams(dimension_semantics=("parallel",)),
    )(B1p, row_factor, col_factor, x1m, b10p)

    return x0_out_p[:n_nodes, :hidden], x1_relu_p[:n_edges, :hidden]


if __name__ == "__main__":
    key = jax.random.PRNGKey(0)
    k1, k2, k3, k4, k5, k6 = jax.random.split(key, 6)

    n_nodes, n_edges, in_ch, hidden = 20, 24, 8, 32

    # Binary incidence with no empty node rows / hyperedge columns so the fractional
    # powers in the normalization are finite (matches the module's assumptions).
    B1 = (jax.random.uniform(k1, (n_nodes, n_edges)) < 0.3).astype(jnp.float32)
    B1 = B1.at[jnp.arange(n_nodes), jnp.arange(n_nodes) % n_edges].set(1.0)
    B1 = B1.at[jnp.arange(n_edges) % n_nodes, jnp.arange(n_edges)].set(1.0)

    x0 = jax.random.normal(k2, (n_nodes, in_ch), jnp.float32)
    w01 = jax.random.normal(k3, (in_ch, hidden), jnp.float32) / jnp.sqrt(float(in_ch))
    w10 = jax.random.normal(k4, (hidden, hidden), jnp.float32) / jnp.sqrt(float(hidden))
    b01 = jax.random.normal(k5, (1, hidden), jnp.float32) * 0.1
    b10 = jax.random.normal(k6, (1, hidden), jnp.float32) * 0.1

    # block_nodes=8 -> 3 node tiles (last one padded): exercises the grid/accumulators.
    x0_out, x1_out = hnhn_layer(x0, B1, w01, w10, b01, b10, block_nodes=8)
    jax.block_until_ready((x0_out, x1_out))

    # Pure-JAX reference (dense rewrite of normalize_incidence + the two convs).
    def ref(B1, x0, w01, w10, b01, b10):
        mask = (B1 != 0).astype(jnp.float32)
        edge_norm = jnp.sum(B1, 0) ** ALPHA
        node_norm = jnp.sum(B1, 1) ** BETA
        row_en = jnp.sum(mask * edge_norm[None, :], 1)
        col_nn = jnp.sum(mask * node_norm[:, None], 0)
        B1n = jnp.where(
            mask > 0,
            B1 * (edge_norm[None, :] / row_en[:, None])
               * (node_norm[:, None] / col_nn[None, :]),
            0.0,
        )
        x1 = B1n.T @ (x0 @ w01) + b01
        x0n = B1n @ (x1 @ w10) + b10
        return jnp.maximum(x0n, 0.0), jnp.maximum(x1, 0.0)

    r0, r1 = ref(B1, x0, w01, w10, b01, b10)
    assert x0_out.shape == (n_nodes, hidden) and x1_out.shape == (n_edges, hidden)
    assert jnp.allclose(x0_out, r0, atol=1e-4, rtol=1e-4), "x_0 mismatch"
    assert jnp.allclose(x1_out, r1, atol=1e-4, rtol=1e-4), "x_1 mismatch"
    print("KERNEL_OK")
</pallas_src>

<mosaic_0001>
module attributes {stable_mosaic.version = 11 : i64} {
  func.func @_stats_kernel(%arg0: i32, %arg1: memref<8x128xf32, #tpu.memory_space<vmem>>, %arg2: memref<1x128xf32, #tpu.memory_space<vmem>>, %arg3: memref<1x128xf32, #tpu.memory_space<vmem>>) attributes {dimension_semantics = [#tpu.dimension_semantics<arbitrary>], iteration_bounds = array<i64: 3>, scalar_prefetch = 0 : i64, scratch_operands = 0 : i64, tpu.core_type = #tpu.core_type<tc>, window_params = [{transform_indices = @transform_0, window_bounds = array<i64: 8, 128>}, {pipeline_mode = #tpu.pipeline_mode<synchronous>, transform_indices = @transform_1, window_bounds = array<i64: 1, 128>}, {pipeline_mode = #tpu.pipeline_mode<synchronous>, transform_indices = @transform_2, window_bounds = array<i64: 1, 128>}]} {
    %c0 = arith.constant 0 : index
    %c0_0 = arith.constant 0 : index
    %0 = vector.load %arg1[%c0, %c0_0] : memref<8x128xf32, #tpu.memory_space<vmem>>, vector<8x128xf32>
    %cst = arith.constant 0.000000e+00 : f32
    %1 = vector.broadcast %cst : f32 to vector<8x128xf32>
    %2 = arith.cmpf one, %0, %1 : vector<8x128xf32>
    %3 = arith.extui %2 : vector<8x128xi1> to vector<8x128xi32>
    %4 = arith.sitofp %3 : vector<8x128xi32> to vector<8x128xf32>
    %cst_1 = arith.constant dense<0.000000e+00> : vector<8xf32>
    %5 = vector.multi_reduction <add>, %0, %cst_1 [1] : vector<8x128xf32> to vector<8xf32>
    %6 = vector.shape_cast %5 : vector<8xf32> to vector<8x1xf32>
    %cst_2 = arith.constant 0.000000e+00 : f32
    %7 = vector.broadcast %cst_2 : f32 to vector<8x1xf32>
    %8 = arith.cmpf ogt, %6, %7 : vector<8x1xf32>
    %9 = math.rsqrt %6 : vector<8x1xf32>
    %cst_3 = arith.constant 0.000000e+00 : f32
    %10 = vector.broadcast %cst_3 : f32 to vector<8x1xf32>
    %11 = arith.select %8, %9, %10 : vector<8x1xi1>, vector<8x1xf32>
    %c0_i32 = arith.constant 0 : i32
    %12 = arith.cmpi eq, %arg0, %c0_i32 : i32
    %13 = arith.extui %12 : i1 to i32
    %c0_i32_4 = arith.constant 0 : i32
    %14 = arith.cmpi ne, %13, %c0_i32_4 : i32
    scf.if %14 {
      %cst_16 = arith.constant 0.000000e+00 : f32
      %30 = vector.broadcast %cst_16 : f32 to vector<1x128xf32>
      %c0_17 = arith.constant 0 : index
      %c0_18 = arith.constant 0 : index
      %31 = vector.load %arg2[%c0_17, %c0_18] : memref<1x128xf32, #tpu.memory_space<vmem>>, vector<1x128xf32>
      tpu.vector_store %arg2[%c0_17, %c0_18], %30 {strides = array<i32>} : memref<1x128xf32, #tpu.memory_space<vmem>>, vector<1x128xf32>,
      %cst_19 = arith.constant 0.000000e+00 : f32
      %32 = vector.broadcast %cst_19 : f32 to vector<1x128xf32>
      %c0_20 = arith.constant 0 : index
      %c0_21 = arith.constant 0 : index
      %33 = vector.load %arg3[%c0_20, %c0_21] : memref<1x128xf32, #tpu.memory_space<vmem>>, vector<1x128xf32>
      tpu.vector_store %arg3[%c0_20, %c0_21], %32 {strides = array<i32>} : memref<1x128xf32, #tpu.memory_space<vmem>>, vector<1x128xf32>,
    } else {
    }
    %c0_5 = arith.constant 0 : index
    %c0_6 = arith.constant 0 : index
    %15 = vector.load %arg2[%c0_5, %c0_6] : memref<1x128xf32, #tpu.memory_space<vmem>>, vector<1x128xf32>
    %cst_7 = arith.constant dense<0.000000e+00> : vector<128xf32>
    %16 = vector.multi_reduction <add>, %0, %cst_7 [0] : vector<8x128xf32> to vector<128xf32>
    %17 = vector.shape_cast %16 : vector<128xf32> to vector<1x128xf32>
    %18 = arith.addf %15, %17 : vector<1x128xf32>
    %c0_8 = arith.constant 0 : index
    %c0_9 = arith.constant 0 : index
    %19 = vector.load %arg2[%c0_8, %c0_9] : memref<1x128xf32, #tpu.memory_space<vmem>>, vector<1x128xf32>
    tpu.vector_store %arg2[%c0_8, %c0_9], %18 {strides = array<i32>} : memref<1x128xf32, #tpu.memory_space<vmem>>, vector<1x128xf32>,
    %c0_10 = arith.constant 0 : index
    %c0_11 = arith.constant 0 : index
    %20 = vector.load %arg3[%c0_10, %c0_11] : memref<1x128xf32, #tpu.memory_space<vmem>>, vector<1x128xf32>
    %21 = vector.broadcast %11 : vector<8x1xf32> to vector<8x128xf32>
    %22 = arith.mulf %4, %21 : vector<8x128xf32>
    %cst_12 = arith.constant dense<0.000000e+00> : vector<128xf32>
    %23 = vector.multi_reduction <add>, %22, %cst_12 [0] : vector<8x128xf32> to vector<128xf32>
    %24 = vector.shape_cast %23 : vector<128xf32> to vector<1x128xf32>
    %25 = arith.addf %20, %24 : vector<1x128xf32>
    %c0_13 = arith.constant 0 : index
    %c0_14 = arith.constant 0 : index
    %26 = vector.load %arg3[%c0_13, %c0_14] : memref<1x128xf32, #tpu.memory_space<vmem>>, vector<1x128xf32>
    tpu.vector_store %arg3[%c0_13, %c0_14], %25 {strides = array<i32>} : memref<1x128xf32, #tpu.memory_space<vmem>>, vector<1x128xf32>,
    %c2_i32 = arith.constant 2 : i32
    %27 = arith.cmpi eq, %arg0, %c2_i32 : i32
    %28 = arith.extui %27 : i1 to i32
    %c0_i32_15 = arith.constant 0 : i32
    %29 = arith.cmpi ne, %28, %c0_i32_15 : i32
    scf.if %29 {
      %c0_16 = arith.constant 0 : index
      %c0_17 = arith.constant 0 : index
      %30 = vector.load %arg2[%c0_16, %c0_17] : memref<1x128xf32, #tpu.memory_space<vmem>>, vector<1x128xf32>
      %c0_18 = arith.constant 0 : index
      %c0_19 = arith.constant 0 : index
      %31 = vector.load %arg3[%c0_18, %c0_19] : memref<1x128xf32, #tpu.memory_space<vmem>>, vector<1x128xf32>
      %32 = math.rsqrt %30 : vector<1x128xf32>
      %cst_20 = arith.constant 0.000000e+00 : f32
      %33 = vector.broadcast %cst_20 : f32 to vector<1x128xf32>
      %34 = arith.cmpf ogt, %30, %33 : vector<1x128xf32>
      %35 = arith.mulf %32, %32 : vector<1x128xf32>
      %36 = arith.mulf %35, %32 : vector<1x128xf32>
      %cst_21 = arith.constant 0.000000e+00 : f32
      %37 = vector.broadcast %cst_21 : f32 to vector<1x128xf32>
      %38 = arith.select %34, %36, %37 : vector<1x128xi1>, vector<1x128xf32>
      %c0_22 = arith.constant 0 : index
      %c0_23 = arith.constant 0 : index
      %39 = vector.load %arg2[%c0_22, %c0_23] : memref<1x128xf32, #tpu.memory_space<vmem>>, vector<1x128xf32>
      tpu.vector_store %arg2[%c0_22, %c0_23], %38 {strides = array<i32>} : memref<1x128xf32, #tpu.memory_space<vmem>>, vector<1x128xf32>,
      %cst_24 = arith.constant 0.000000e+00 : f32
      %40 = vector.broadcast %cst_24 : f32 to vector<1x128xf32>
      %41 = arith.cmpf ogt, %31, %40 : vector<1x128xf32>
      %42 = arith.divf %38, %31 : vector<1x128xf32>
      %cst_25 = arith.constant 0.000000e+00 : f32
      %43 = vector.broadcast %cst_25 : f32 to vector<1x128xf32>
      %44 = arith.select %41, %42, %43 : vector<1x128xi1>, vector<1x128xf32>
      %c0_26 = arith.constant 0 : index
      %c0_27 = arith.constant 0 : index
      %45 = vector.load %arg3[%c0_26, %c0_27] : memref<1x128xf32, #tpu.memory_space<vmem>>, vector<1x128xf32>
      tpu.vector_store %arg3[%c0_26, %c0_27], %44 {strides = array<i32>} : memref<1x128xf32, #tpu.memory_space<vmem>>, vector<1x128xf32>,
    } else {
    }
    return
  }
  func.func @transform_0(%arg0: i32) -> (i32, i32) {
    %c0_i32 = arith.constant 0 : i32
    %c0_i32_0 = arith.constant 0 : i32
    return %arg0, %c0_i32 : i32, i32
  }
  func.func @transform_1(%arg0: i32) -> (i32, i32) {
    %c0_i32 = arith.constant 0 : i32
    %c0_i32_0 = arith.constant 0 : i32
    %c0_i32_1 = arith.constant 0 : i32
    return %c0_i32, %c0_i32_0 : i32, i32
  }
  func.func @transform_2(%arg0: i32) -> (i32, i32) {
    %c0_i32 = arith.constant 0 : i32
    %c0_i32_0 = arith.constant 0 : i32
    %c0_i32_1 = arith.constant 0 : i32
    return %c0_i32, %c0_i32_0 : i32, i32
  }
}

</mosaic_0001>

<bundles_post_ra>
// kernel: tpu_custom_call.1
= control target key start
LH: loop header
LB: loop body
LE: loop exit
PB: predicated region body
PF: predicated region fallthrough
CT: control target
= control target key end

     0   :  { %8 = vsyncpa [#allocation3], 0  ;;  %s648_s0 = inlined_call_operand.hbm [shape: f32[24,128], index: 0, kind: input, shape index: {}]   ;;  %s649_s1 = inlined_call_operand.hbm [shape: f32[1,128], index: 1, kind: output, shape index: {0}]   ;;  %s650_s2 = inlined_call_operand.hbm [shape: f32[1,128], index: 2, kind: output, shape index: {1}]  }
   0x1   :  { %10 = vsyncpa [#allocation3 + $0x1], 0 }
   0x2   :  { %11 = vsyncpa [#allocation4], 0 }
   0x3   :  { %12 = vsyncpa [#allocation7], 0  ;;  %s499_s9 = smov 0   ;;  %s501_s10 = smov 0  }
   0x4   :  { %s503_s11 = smov 0   ;;  %s505_s12 = smov 0  }
   0x5 LB: > { %s518_s13 = sadd.s32 4294967295, %s477_s12   ;;  %s521_s14 = sadd.s32 1, %s477_s12   ;;  %s477_s12 = sphi %s505_s12, %s658_s12   ;;  %s473_s11 = sphi %s503_s11, %s657_s11   ;;  %s469_s10 = sphi %s501_s10, %s656_s10   ;;  %s465_s9 = sphi %s499_s9, %s655_s9  }
   0x6   : > { %s22_s15 = ssub.s32 %s477_s12, %s521_s14  ;;  %s25_s16 = sadd.s32 1, %s473_s11 }
   0x7   : > { %p23_p0 = scmp.eq.s32.totalorder %s22_s15, 0  ;;  %p32_p1 = scmp.ne.s32.totalorder %s473_s11, %s469_s10 }
   0x8   : > { %p33_p2 = scmp.eq.s32.totalorder %s477_s12, 0  ;;  %p38_p3 = scmp.ne.s32.totalorder %s469_s10, %s465_s9 }
   0x9   : > { %s531_s17 = scalar_select %p23_p0, %s473_s11, %s25_s16  }
   0xa   : > { %p34_p4 = por %p33_p2, %p32_p1  ;;  %p39_p5 = scmp.eq.s32.totalorder %s518_s13, 0 }
   0xb   : > { %p306_p6 = scmp.lt.s32.totalorder %s477_s12, 3  ;;  %s104_s19 = sand.u32 1, %s473_s11  }
   0xc   : > { %p535_p7 = por %p39_p5, %p38_p3  ;;  %s279_s20 = sshll.u32 %s104_s19, 3 }
   0xd   : > { %s280_s21 = sshll.u32 %s477_s12, 7  ;;  %s108_s25 = scalar_lea.vmem [#allocation2], %s279_s20 }
   0xe   : > { %s544_s24 = scalar_lea.hbm %s648_s0, %s280_s21  ;;  %s115_s26 = sshll.u32 %s108_s25, 4  ;;  %s546_s26 = int_to_ptr.vmem [resolvable:$true] %s115_s26 }
   0xf   : > { %p548_p8 = pnand %p306_p6, %p34_p4  ;;  %s105_s28 = scalar_lea.sflag [#allocation3], %s104_s19 }
  0x10   : > { %s353_s29 = scalar_lea.hbm %s544_s24, 128  ;;  %s358_s4 = scalar_lea.hbm %s648_s0, 384 }
  0x11   : > { %p354_p11 = scmp.ne.s32.totalorder %s544_s24, %s353_s29  ;;  %p355_p12 = pneg %p548_p8 }
  0x12   : > { %p359_p1 = scmp.lt.u32.totalorder %s544_s24, %s648_s0  ;;  %p360_p2 = scmp.lt.u32.totalorder %s358_s4, %s353_s29 }
  0x13   : > { %p356_p13 = pnand %p355_p12, %p354_p11  ;;  %p362_p4 = scmp.lt.u32.totalorder %s353_s29, %s544_s24 }
  0x14   : > { %p361_p3 = por %p360_p2, %p359_p1 }
  0x15   : > { %p357_p0 = pneg %p356_p13 }
  0x16   : > { %p363_p5 = por %p362_p4, %p361_p3 }
  0x18   : > { %p364_p6 = pnand %p363_p5, %p357_p0 }
  0x1a   : > { %367 = shalt.err (!%p364_p6)
}
  0x1b   : > { %s368_s7 = scalar_lea.vmem %s546_s26, 128  ;;  %s479_s8 = smov [#allocation2]  }
  0x1c   : > { %p369_p11 = scmp.ne.s32.totalorder %s546_s26, %s368_s7  ;;  %s373_s9 = sshll.u32 %s479_s8, 4  ;;  %s374_s9 = int_to_ptr.vmem [resolvable:$false] %s373_s9 }
  0x1d   : > { %s375_s15 = scalar_lea.vmem %s374_s9, 256  ;;  %p376_p10 = scmp.lt.s32.totalorder %s546_s26, %s374_s9 }
  0x1e   : > { %p371_p13 = pnand %p369_p11, %p355_p12  ;;  %p377_p1 = scmp.lt.s32.totalorder %s375_s15, %s368_s7 }
  0x20   : > { %p372_p9 = pneg %p371_p13  ;;  %p378_p2 = por %p377_p1, %p376_p10 }
  0x22   : > { %p379_p3 = pnand %p378_p2, %p372_p9 }
  0x24   : > { %382 = shalt.err (!%p379_p3)
}
  0x25   : > { %305 = dma.hbm_to_vmem [thread:$0]  (!%p548_p8), %s544_s24, 128, %s546_s26, %s105_s28  }
  0x26   : > { %p653_p0 = scmp.lt.s32.totalorder %s477_s12, 4  ;;  %p654_p4 = scmp.ge.s32.totalorder %s477_s12, 1 }
  0x28   : > { %p121_p12 = pnand %p654_p4, %p653_p0 }
  0x29   : > { %s126_s16 = sand.u32 (!%p121_p12), 1, %s469_s10  }
  0x2a   : > { %124 = sbr.rel (%p121_p12) target bundleno = 295 (0x127), region = 24  ;;  %s282_s19 = sshll.u32 (!%p121_p12), %s126_s16, 3 }
  0x2b   : > { %s127_s20 = scalar_lea.sflag (!%p121_p12), [#allocation3], %s126_s16  ;;  %s130_s21 = scalar_lea.vmem (!%p121_p12), [#allocation2], %s282_s19 }
  0x31   : > { %452 = dma.done.wait (%p535_p7), %s127_s20, 128  }
  0x32   : > { %454 = vsyncadd (%p535_p7), %s127_s20, 4294967168  ;;  %v146_v0 = vld [vmem:[%s130_s21] sm:$0xff]  ;;  %v480_v1 = vmov 0.0   ;;  %p284_p8 = scmp.ne.s32.totalorder %s518_s13, 0 }
  0x33   : > { %vm147_vm0 = vcmp.ne.f32.partialorder %v146_v0, 0.0  ;;  %150 = vadd.xlane.f32.xlu0 %v146_v0  ;;  %v481_v6 = vmov (!%p284_p8), 0.0  }
  0x34   : > { %v283_v2 = vsel %vm147_vm0, 1.0, %v480_v1  ;;  %159 = vst [vmem:[#allocation5] sm:$0x1] (!%p284_p8), %v481_v6  ;;  %160 = vst [vmem:[#allocation6] sm:$0x1] (!%p284_p8), %v481_v6 }
  0xc0   : > { %v151_v3 = vpop.xlane.xlu0 %150 }
  0xc1   : > { %347 = vrsqrt.f32 %v151_v3  ;;  %vm152_vm1 = vcmp.gt.f32.partialorder %v151_v3, 0.0 }
  0xc6   : > { %158 = sbr.rel (%p284_p8) target bundleno = 205 (0xcd), region = 32 }
  0xcb   : > { %v348_v4 = vpop.eup %347 }
  0xcc   : > { %v154_v5 = vsel %vm152_vm1, %v348_v4, 0.0 }
  0xcd PF: > { %v162_v7 = vrot.slane %v146_v0, 4  ;;  %v171_v8 = vmul.f32 %v283_v2, %v154_v5  ;;  %v161_v17 = vld [vmem:[#allocation5] sm:$0x1]  ;;  %v170_v20 = vld [vmem:[#allocation6] sm:$0x1]  ;;  %p285_p7 = scmp.ne.s32.totalorder %s518_s13, 2 }
  0xcf   : > { %v163_v9 = vadd.f32 %v162_v7, %v146_v0  ;;  %v172_v10 = vrot.slane %v171_v8, 4 }
  0xd1   : > { %v164_v11 = vrot.slane %v163_v9, 2  ;;  %v173_v12 = vadd.f32 %v172_v10, %v171_v8 }
  0xd3   : > { %v165_v13 = vadd.f32 %v164_v11, %v163_v9  ;;  %v174_v14 = vrot.slane %v173_v12, 2 }
  0xd5   : > { %v166_v15 = vrot.slane %v165_v13, 1  ;;  %v175_v16 = vadd.f32 %v174_v14, %v173_v12 }
  0xd7   : > { %v167_v18 = vadd.f32 %v166_v15, %v165_v13  ;;  %v176_v19 = vrot.slane %v175_v16, 1  ;;  %183 = sbr.rel (%p285_p7) target bundleno = 247 (0xf7), region = 36 }
  0xd9   : > { %v168_v21 = vadd.f32 %v167_v18, %v161_v17  ;;  %v177_v22 = vadd.f32 %v176_v19, %v175_v16 }
  0xdb   : > { %169 = vst [vmem:[#allocation5] sm:$0x1] %v168_v21  ;;  %v178_v23 = vadd.f32 %v177_v22, %v170_v20 }
  0xdd   : > { %179 = vst [vmem:[#allocation6] sm:$0x1] %v178_v23 }
  0xe2   : > { %v184_v24 = vld [vmem:[#allocation5] sm:$0x1] }
  0xe3   : > { %349 = vrsqrt.f32 %v184_v24  ;;  %vm187_vm2 = vcmp.gt.f32.partialorder %v184_v24, 0.0 }
  0xe4   : > { %v185_v25 = vld [vmem:[#allocation6] sm:$0x1] }
  0xe5   : > { %351 = vrcp.f32 %v185_v25  ;;  %vm192_vm3 = vcmp.gt.f32.partialorder %v185_v25, 0.0 }
  0xed   : > { %v350_v26 = vpop.eup %349 }
  0xee   : > { %v188_v27 = vmul.f32 %v350_v26, %v350_v26 }
  0xef   : > { %v352_v28 = vpop.eup %351 }
  0xf0   : > { %v189_v29 = vmul.f32 %v350_v26, %v188_v27 }
  0xf2   : > { %v190_v30 = vsel %vm187_vm2, %v189_v29, 0.0 }
  0xf3   : > { %191 = vst [vmem:[#allocation5] sm:$0x1] %v190_v30  ;;  %v194_v31 = vmul.f32 %v352_v28, %v190_v30 }
  0xf5   : > { %v195_v32 = vsel %vm192_vm3, %v194_v31, 0.0 }
  0xf6   : > { %196 = vst [vmem:[#allocation6] sm:$0x1] %v195_v32 }
  0xf7 PF: > { %p307_p9 = scmp.eq.s32.totalorder %s518_s13, 2  ;;  %s482_s12 = smov [#allocation5]  }
  0xf8   : > { %s204_s18 = sshll.u32 %s482_s12, 4  ;;  %s483_s22 = smov [#allocation6]   ;;  %s205_s18 = int_to_ptr.vmem [resolvable:$true] %s204_s18 }
  0xf9   : > { %s215_s23 = sshll.u32 %s483_s22, 4  ;;  %s383_s24 = scalar_lea.vmem %s205_s18, 16  ;;  %s216_s23 = int_to_ptr.vmem [resolvable:$true] %s215_s23 }
  0xfa   : > { %p384_p10 = scmp.ne.s32.totalorder %s205_s18, %s383_s24  ;;  %s389_s25 = scalar_lea.vmem %s205_s18, 32 }
  0xfb   : > { %p390_p11 = scmp.lt.s32.totalorder %s205_s18, %s205_s18  ;;  %p391_p13 = scmp.lt.s32.totalorder %s389_s25, %s383_s24 }
  0xfc   : > { %p385_p5 = pnand %p384_p10, %p307_p9 }
  0xfd   : > { %p392_p1 = por %p391_p13, %p390_p11 }
  0xfe   : > { %p386_p6 = pneg %p385_p5 }
 0x100   : > { %p393_p2 = pnand %p392_p1, %p386_p6 }
 0x102   : > { %396 = shalt.err (!%p393_p2)
}
 0x103   : > { %s397_s28 = scalar_lea.hbm %s649_s1, 16 }
 0x104   : > { %p398_p3 = scmp.ne.s32.totalorder %s649_s1, %s397_s28  ;;  %p403_p12 = scmp.lt.u32.totalorder %s397_s28, %s649_s1 }
 0x106   : > { %p399_p0 = pnand %p398_p3, %p307_p9 }
 0x108   : > { %p400_p4 = pneg %p399_p0 }
 0x10a   : > { %p405_p8 = pnand %p403_p12, %p400_p4 }
 0x10c   : > { %408 = shalt.err (!%p405_p8)
}
 0x10d   : > { %295 = dma.vmem_to_hbm [thread:$0]  (%p307_p9), %s205_s18, 16, %s649_s1, [#allocation4]  }
 0x10e   : > { %s409_s7 = scalar_lea.vmem %s216_s23, 16  ;;  %s415_s8 = scalar_lea.vmem %s216_s23, 32 }
 0x10f   : > { %p410_p7 = scmp.ne.s32.totalorder %s216_s23, %s409_s7  ;;  %p416_p6 = scmp.lt.s32.totalorder %s216_s23, %s216_s23 }
 0x110   : > { %p417_p11 = scmp.lt.s32.totalorder %s415_s8, %s409_s7 }
 0x111   : > { %p411_p10 = pnand %p410_p7, %p307_p9 }
 0x112   : > { %p418_p13 = por %p417_p11, %p416_p6 }
 0x113   : > { %p412_p5 = pneg %p411_p10 }
 0x115   : > { %p419_p1 = pnand %p418_p13, %p412_p5 }
 0x117   : > { %422 = shalt.err (!%p419_p1)
}
 0x118   : > { %s423_s16 = scalar_lea.hbm %s650_s2, 16 }
 0x119   : > { %p424_p2 = scmp.ne.s32.totalorder %s650_s2, %s423_s16  ;;  %p429_p4 = scmp.lt.u32.totalorder %s423_s16, %s650_s2 }
 0x11b   : > { %p425_p3 = pnand %p424_p2, %p307_p9 }
 0x11d   : > { %p426_p0 = pneg %p425_p3 }
 0x11f   : > { %p431_p12 = pnand %p429_p4, %p426_p0 }
 0x121   : > { %434 = shalt.err (!%p431_p12)
}
 0x122   : > { %297 = dma.vmem_to_hbm [thread:$0]  (%p307_p9), %s216_s23, 16, %s650_s2, [#allocation7]  }
 0x123   : > { %456 = dma.done.wait (%p307_p9), [#allocation4], 16  }
 0x124   : > { %458 = vsyncadd (%p307_p9), [#allocation4], 4294967280 }
 0x125   : > { %460 = dma.done.wait (%p307_p9), [#allocation7], 16  }
 0x126   : > { %462 = vsyncadd (%p307_p9), [#allocation7], 4294967280 }
 0x127 PF: > { %p15_p8 = scmp.ge.s32.totalorder %s521_s14, 5   ;;  %s655_s9 = smov %s469_s10 }
 0x128   : > { %s656_s10 = smov %s473_s11  ;;  %s657_s11 = smov %s531_s17 }
 0x129   : > { %s658_s12 = smov %s521_s14  ;;  %17 = sbr.rel (!%p15_p8) target bundleno = 5 (0x5), region = 77 }
 0x130   :  { %232 = vsyncpa [#allocation3], 1 }
 0x131   :  { %234 = vsyncpa [#allocation3 + $0x1], 1 }
 0x132   :  { %235 = vsyncpa [#allocation4], 1 }
 0x133   :  { %237 = vsyncpa [#allocation4 + $0x1], 1 }
 0x134   :  { %238 = vsyncpa [#allocation7], 1 }

</bundles_post_ra>
